<compile_context>
chip_gen: v5e
topology: v5e:2x2
jax: 0.10.0
libtpu: 0.0.40
codegen_flags: <defaults>
</compile_context>

<pallas_src>
import jax
import jax.numpy as jnp
from jax.experimental import pallas as pl
from jax.experimental.pallas import tpu as pltpu


def gru_kernel(xh_ref, w_ref, wm_ref, b_ref, out_ref):
    H = out_ref.shape[-1]

    xh = xh_ref[...]                       # (TM, H+IN)  [h | x], native bf16 -> MXU
    h = xh[:, 0:H]                         # 128-lane-aligned slice of the state

    # Single fused projection (+ pre-summed biases): (TM, 3H), f32 accumulation.
    #   cols [0:H)   = update-gate preact (x and h parts)
    #   cols [H:2H)  = reset-gate preact  (x and h parts)
    #   cols [2H:3H) = memory x-part only (h rows of that column are zero)
    p = jnp.dot(xh, w_ref[...], preferred_element_type=jnp.float32) \
        + b_ref[...].astype(jnp.float32)

    # One EUP pass over the joined (z|r) slab; slices are 128-lane aligned.
    zr = jax.nn.sigmoid(p[:, 0:2 * H])
    z = zr[:, 0:H]
    r = zr[:, H:2 * H]

    h_f32 = h.astype(jnp.float32)
    rh = (r * h_f32).astype(h.dtype)       # back to bf16 for the MXU
    mem = jnp.tanh(p[:, 2 * H:3 * H]
                   + jnp.dot(rh, wm_ref[...], preferred_element_type=jnp.float32))

    # (1-z)*h + z*mem  ==  h + z*(mem - h)   (one fewer VALU op per element)
    out_ref[...] = (h_f32 + z * (mem - h_f32)).astype(out_ref.dtype)


def _round_up(v, m):
    return (v + m - 1) // m * m


def gru_forward(x, state, params, *, block_m=None):
    """x: (B, input_size), state: (B, H) -> new state (B, H)."""
    B, IN = x.shape
    H = state.shape[1]
    w, wm, b = params["w"], params["wm"], params["b"]

    # --- batch tiling ---------------------------------------------------------
    # Small batches: one tile (launch/pipeline overhead dominates; 0.35 us/step).
    # Large batches: ~256-row tiles, even tile count so v7x shards both TCs
    # (harmless on single-TC v5e/v6e). v5e's 128-row MXU is filled either way.
    if block_m is None:
        if B <= 512:
            n_tiles = 1
            block_m = _round_up(B, 8)
        else:
            n_tiles = pl.cdiv(B, 256)
            if n_tiles % 2:
                n_tiles += 1
            block_m = _round_up(pl.cdiv(B, n_tiles), 8)
    else:
        block_m = _round_up(block_m, 8)
        n_tiles = pl.cdiv(B, block_m)

    B_pad = block_m * n_tiles

    # Concatenate [h | x] in the wrapper (h first -> its in-kernel slice is
    # 128-lane aligned). Zero-pad the batch so no tail rows are silently dropped.
    xh = jnp.concatenate([state, x], axis=1)               # (B, H+IN)
    if B_pad != B:
        xh = jnp.pad(xh, ((0, B_pad - B), (0, 0)))

    # --- VMEM budget (generation-aware) --------------------------------------
    act_bytes = 2 * block_m * ((H + IN) + H) * jnp.dtype(xh.dtype).itemsize  # in+out, dbl-buf
    w_bytes = ((H + IN) * 3 * H + H * H) * jnp.dtype(w.dtype).itemsize       # resident weights
    b_bytes = 3 * H * 4
    est = act_bytes + w_bytes + b_bytes
    try:
        vmem_cap = pltpu.get_tpu_info().vmem_capacity_bytes   # 128 MiB v5e/v6e, 64 MiB v7x
    except Exception:
        vmem_cap = 64 << 20
    vmem_limit = int(min(0.85 * vmem_cap, max(32 << 20, 4 * est)))

    grid_spec = pltpu.PrefetchScalarGridSpec(
        num_scalar_prefetch=0,
        grid=(n_tiles,),
        in_specs=[
            pl.BlockSpec((block_m, H + IN), lambda i: (i, 0)),   # [h | x] tile
            pl.BlockSpec((H + IN, 3 * H), lambda i: (0, 0)),     # fused weights (resident)
            pl.BlockSpec((H, H), lambda i: (0, 0)),              # memory h-weights (resident)
            pl.BlockSpec((1, 3 * H), lambda i: (0, 0)),          # fused biases (resident)
        ],
        out_specs=pl.BlockSpec((block_m, H), lambda i: (i, 0)),
    )
    # TODO(synk): if H grows to O(1k) on v7x, single-buffer the weight specs
    # (pipeline_mode=pl.Buffered(1)) or tile the 3H output axis to stay in VMEM.

    out = pl.pallas_call(
        gru_kernel,
        out_shape=jax.ShapeDtypeStruct((B_pad, H), state.dtype),
        grid_spec=grid_spec,
        compiler_params=pltpu.CompilerParams(
            dimension_semantics=("parallel",),
            vmem_limit_bytes=vmem_limit,
        ),
    )(xh, w, wm, b)

    return out[:B] if B_pad != B else out


def init_params(key, input_size, embed_size, dtype=jnp.bfloat16):
    """nn.Linear-style U(-1/sqrt(fan_in), 1/sqrt(fan_in)) init per gate, fused as:
         w  = [[Wuh | Wrh |  0 ],        : (H+in, 3H)   rows 0:H   -> state
               [Wux | Wrx | Wmx]]                        rows H:H+in -> x
         wm = Wmh                        : (H, H)       (applied to r*h in-kernel)
         b  = [bux+buh | brx+brh | bmx+bmh] : (1, 3H) f32 (pre-summed bias pairs)
       Weights already transposed to (in_features, out_features).
       Also returns the raw per-gate params for the pure-JAX reference."""
    def linear_init(k, fan_in, fan_out):
        kw, kb = jax.random.split(k)
        bound = 1.0 / (fan_in ** 0.5)
        wt = jax.random.uniform(kw, (fan_in, fan_out), minval=-bound, maxval=bound,
                                dtype=jnp.float32)
        bb = jax.random.uniform(kb, (1, fan_out), minval=-bound, maxval=bound,
                                dtype=jnp.float32)
        return wt.astype(dtype), bb

    keys = jax.random.split(key, 6)
    wux, bux = linear_init(keys[0], input_size, embed_size)
    wuh, buh = linear_init(keys[1], embed_size, embed_size)
    wrx, brx = linear_init(keys[2], input_size, embed_size)
    wrh, brh = linear_init(keys[3], embed_size, embed_size)
    wmx, bmx = linear_init(keys[4], input_size, embed_size)
    wmh, bmh = linear_init(keys[5], embed_size, embed_size)

    H = embed_size
    w_h_rows = jnp.concatenate([wuh, wrh, jnp.zeros((H, H), dtype=dtype)], axis=1)  # (H, 3H)
    w_x_rows = jnp.concatenate([wux, wrx, wmx], axis=1)                             # (in, 3H)
    fused = {
        "w": jnp.concatenate([w_h_rows, w_x_rows], axis=0),                         # (H+in, 3H)
        "wm": wmh,                                                                  # (H, H)
        "b": jnp.concatenate([bux + buh, brx + brh, bmx + bmh], axis=1),            # (1, 3H) f32
    }
    raw = {"wux": wux, "bux": bux, "wuh": wuh, "buh": buh,
           "wrx": wrx, "brx": brx, "wrh": wrh, "brh": brh,
           "wmx": wmx, "bmx": bmx, "wmh": wmh, "bmh": bmh}
    return fused, raw


def gru_reference(x, state, raw):
    """Pure-JAX f32 reference mirroring the torch module literally (per-gate Linears)."""
    xf = x.astype(jnp.float32)
    hf = state.astype(jnp.float32)

    def lin(v, wt, bb):
        return v @ wt.astype(jnp.float32) + bb

    z = jax.nn.sigmoid(lin(xf, raw["wux"], raw["bux"]) + lin(hf, raw["wuh"], raw["buh"]))
    r = jax.nn.sigmoid(lin(xf, raw["wrx"], raw["brx"]) + lin(hf, raw["wrh"], raw["brh"]))
    mem = jnp.tanh(lin(xf, raw["wmx"], raw["bmx"]) + lin(r * hf, raw["wmh"], raw["bmh"]))
    return (1.0 - z) * hf + z * mem


if __name__ == "__main__":
    input_size = 64
    embed_size = 128     # lane-dense (multiple of 128); fused projection is 3H = 384
    batch = 32           # small batch -> single tile, grid=(1,)
    dtype = jnp.bfloat16

    key = jax.random.PRNGKey(0)
    k_params, k_x, k_h = jax.random.split(key, 3)

    params, raw = init_params(k_params, input_size, embed_size, dtype=dtype)
    x = jax.random.normal(k_x, (batch, input_size), dtype=jnp.float32).astype(dtype)
    state = jax.random.normal(k_h, (batch, embed_size), dtype=jnp.float32).astype(dtype)

    out = jax.block_until_ready(gru_forward(x, state, params))

    ref = gru_reference(x, state, raw)
    assert out.shape == (batch, embed_size)
    err = float(jnp.max(jnp.abs(out.astype(jnp.float32) - ref)))
    assert jnp.allclose(out.astype(jnp.float32), ref, atol=2e-2, rtol=2e-2), err

    # TODO(synk): for full-sequence use, add a sequential time axis inside the
    # kernel (in-kernel loop or "arbitrary" grid axis) carrying h in VMEM scratch
    # / input_output_aliases so weights stay resident across all timesteps.
    print("KERNEL_OK")
</pallas_src>

<mosaic_0001>
module attributes {stable_mosaic.version = 11 : i64} {
  func.func @gru_kernel(%arg0: i32, %arg1: memref<32x192xbf16, #tpu.memory_space<vmem>>, %arg2: memref<192x384xbf16, #tpu.memory_space<vmem>>, %arg3: memref<128x128xbf16, #tpu.memory_space<vmem>>, %arg4: memref<1x384xf32, #tpu.memory_space<vmem>>, %arg5: memref<32x128xbf16, #tpu.memory_space<vmem>>) attributes {dimension_semantics = [#tpu.dimension_semantics<parallel>], iteration_bounds = array<i64: 1>, scalar_prefetch = 0 : i64, scratch_operands = 0 : i64, tpu.core_type = #tpu.core_type<tc>, window_params = [{transform_indices = @transform_0, window_bounds = array<i64: 32, 192>}, {pipeline_mode = #tpu.pipeline_mode<synchronous>, transform_indices = @transform_1, window_bounds = array<i64: 192, 384>}, {pipeline_mode = #tpu.pipeline_mode<synchronous>, transform_indices = @transform_2, window_bounds = array<i64: 128, 128>}, {pipeline_mode = #tpu.pipeline_mode<synchronous>, transform_indices = @transform_3, window_bounds = array<i64: 1, 384>}, {transform_indices = @transform_4, window_bounds = array<i64: 32, 128>}]} {
    %c0 = arith.constant 0 : index
    %c0_0 = arith.constant 0 : index
    %0 = vector.load %arg1[%c0, %c0_0] : memref<32x192xbf16, #tpu.memory_space<vmem>>, vector<32x192xbf16>
    %1 = vector.extract_strided_slice %0 {offsets = [0, 0], sizes = [32, 128], strides = [1, 1]} : vector<32x192xbf16> to vector<32x128xbf16>
    %c0_1 = arith.constant 0 : index
    %c0_2 = arith.constant 0 : index
    %2 = vector.load %arg2[%c0_1, %c0_2] : memref<192x384xbf16, #tpu.memory_space<vmem>>, vector<192x384xbf16>
    %cst = arith.constant dense<0.000000e+00> : vector<32x384xf32>
    %3 = tpu.matmul %0, %2, %cst {dimension_numbers = #tpu.dot_dimension_numbers<[1], [0], [0], [1], [0, 0, 1, 1], [], []>} : vector<32x192xbf16>, vector<192x384xbf16>, vector<32x384xf32> -> vector<32x384xf32>
    %c0_3 = arith.constant 0 : index
    %c0_4 = arith.constant 0 : index
    %4 = vector.load %arg4[%c0_3, %c0_4] : memref<1x384xf32, #tpu.memory_space<vmem>>, vector<1x384xf32>
    %5 = vector.broadcast %4 : vector<1x384xf32> to vector<32x384xf32>
    %6 = arith.addf %3, %5 : vector<32x384xf32>
    %7 = vector.extract_strided_slice %6 {offsets = [0, 0], sizes = [32, 256], strides = [1, 1]} : vector<32x384xf32> to vector<32x256xf32>
    %8 = arith.negf %7 : vector<32x256xf32>
    %9 = math.exp %8 : vector<32x256xf32>
    %cst_5 = arith.constant 1.000000e+00 : f32
    %10 = vector.broadcast %cst_5 : f32 to vector<32x256xf32>
    %11 = arith.addf %10, %9 : vector<32x256xf32>
    %12 = arith.divf %10, %11 : vector<32x256xf32>
    %13 = vector.extract_strided_slice %12 {offsets = [0, 0], sizes = [32, 128], strides = [1, 1]} : vector<32x256xf32> to vector<32x128xf32>
    %14 = vector.extract_strided_slice %12 {offsets = [0, 128], sizes = [32, 128], strides = [1, 1]} : vector<32x256xf32> to vector<32x128xf32>
    %15 = arith.extf %1 : vector<32x128xbf16> to vector<32x128xf32>
    %16 = arith.mulf %14, %15 : vector<32x128xf32>
    %17 = arith.truncf %16 : vector<32x128xf32> to vector<32x128xbf16>
    %18 = vector.extract_strided_slice %6 {offsets = [0, 256], sizes = [32, 128], strides = [1, 1]} : vector<32x384xf32> to vector<32x128xf32>
    %c0_6 = arith.constant 0 : index
    %c0_7 = arith.constant 0 : index
    %19 = vector.load %arg3[%c0_6, %c0_7] : memref<128x128xbf16, #tpu.memory_space<vmem>>, vector<128x128xbf16>
    %cst_8 = arith.constant dense<0.000000e+00> : vector<32x128xf32>
    %20 = tpu.matmul %17, %19, %cst_8 {dimension_numbers = #tpu.dot_dimension_numbers<[1], [0], [0], [1], [0, 0, 1, 1], [], []>} : vector<32x128xbf16>, vector<128x128xbf16>, vector<32x128xf32> -> vector<32x128xf32>
    %21 = arith.addf %18, %20 : vector<32x128xf32>
    %22 = math.tanh %21 : vector<32x128xf32>
    %23 = arith.subf %22, %15 : vector<32x128xf32>
    %24 = arith.mulf %13, %23 : vector<32x128xf32>
    %25 = arith.addf %15, %24 : vector<32x128xf32>
    %26 = arith.truncf %25 : vector<32x128xf32> to vector<32x128xbf16>
    %c0_9 = arith.constant 0 : index
    %c0_10 = arith.constant 0 : index
    %27 = vector.load %arg5[%c0_9, %c0_10] : memref<32x128xbf16, #tpu.memory_space<vmem>>, vector<32x128xbf16>
    tpu.vector_store %arg5[%c0_9, %c0_10], %26 {strides = array<i32>} : memref<32x128xbf16, #tpu.memory_space<vmem>>, vector<32x128xbf16>,
    return
  }
  func.func @transform_0(%arg0: i32) -> (i32, i32) {
    %c0_i32 = arith.constant 0 : i32
    %c0_i32_0 = arith.constant 0 : i32
    return %arg0, %c0_i32 : i32, i32
  }
  func.func @transform_1(%arg0: i32) -> (i32, i32) {
    %c0_i32 = arith.constant 0 : i32
    %c0_i32_0 = arith.constant 0 : i32
    %c0_i32_1 = arith.constant 0 : i32
    return %c0_i32, %c0_i32_0 : i32, i32
  }
  func.func @transform_2(%arg0: i32) -> (i32, i32) {
    %c0_i32 = arith.constant 0 : i32
    %c0_i32_0 = arith.constant 0 : i32
    %c0_i32_1 = arith.constant 0 : i32
    return %c0_i32, %c0_i32_0 : i32, i32
  }
  func.func @transform_3(%arg0: i32) -> (i32, i32) {
    %c0_i32 = arith.constant 0 : i32
    %c0_i32_0 = arith.constant 0 : i32
    %c0_i32_1 = arith.constant 0 : i32
    return %c0_i32, %c0_i32_0 : i32, i32
  }
  func.func @transform_4(%arg0: i32) -> (i32, i32) {
    %c0_i32 = arith.constant 0 : i32
    %c0_i32_0 = arith.constant 0 : i32
    return %arg0, %c0_i32 : i32, i32
  }
}

</mosaic_0001>

<bundles_post_ra>
// kernel: tpu_custom_call.1
= control target key start
LH: loop header
LB: loop body
LE: loop exit
PB: predicated region body
PF: predicated region fallthrough
CT: control target
= control target key end

     0   :  { %9 = vsyncpa [#allocation3], 0  ;;  %s1364_s0 = inlined_call_operand.hbm [shape: bf16[32,192], index: 0, kind: input, shape index: {}]   ;;  %s1365_s1 = inlined_call_operand.hbm [shape: bf16[192,384], index: 1, kind: input, shape index: {}]   ;;  %s1366_s2 = inlined_call_operand.hbm [shape: bf16[128,128], index: 2, kind: input, shape index: {}]   ;;  %s1367_s3 = inlined_call_operand.hbm [shape: f32[1,384], index: 3, kind: input, shape index: {}]   ;;  %s1368_s4 = inlined_call_operand.hbm [shape: bf16[32,128], index: 4, kind: output, shape index: {}]  }
   0x1   :  { %10 = vsyncpa [#allocation6], 0 }
   0x2   :  { %11 = vsyncpa [#allocation9], 0  ;;  %s30_s17 = sshll.u32 %s1365_s1, 4  ;;  %s31_s17 = int_to_ptr.hbm [resolvable:$true] %s30_s17 }
   0x3   :  { %12 = vsyncpa [#allocation4], 0  ;;  %s1217_s18 = smov [#allocation5]   ;;  %s17_s22 = sshll.u32 %s1364_s0, 4  ;;  %s18_s22 = int_to_ptr.hbm [resolvable:$true] %s17_s22 }
   0x4   :  { %s32_s19 = sshll.u32 %s1217_s18, 4  ;;  %s1218_s23 = smov 192   ;;  %s33_s19 = int_to_ptr.vmem [resolvable:$true] %s32_s19 }
   0x5   :  { %s1219_s24 = smov 12   ;;  %s1220_s25 = smov [#allocation2]  }
   0x6   :  { %38 = dma.hbm_to_vmem [thread:$0]  %s31_s17, 4608, %s33_s19, [#allocation6], %s1218_s23, %s1218_s23, %s1219_s24  }
   0x7   :  { %s19_s26 = sshll.u32 %s1220_s25, 4  ;;  %s1221_s27 = smov 128   ;;  %s20_s26 = int_to_ptr.vmem [resolvable:$true] %s19_s26 }
   0x8   :  { %s1222_s28 = smov 8   ;;  %s43_s30 = sshll.u32 %s1366_s2, 4  ;;  %s44_s30 = int_to_ptr.hbm [resolvable:$true] %s43_s30 }
   0x9   :  { %25 = dma.hbm_to_vmem [thread:$0]  %s18_s22, 512, %s20_s26, [#allocation3], %s1221_s27, %s1221_s27, %s1222_s28  }
   0xa   :  { %s1223_s5 = smov [#allocation7]   ;;  %s57_s8 = sshll.u32 %s1367_s3, 4  ;;  %s58_s8 = int_to_ptr.hbm [resolvable:$true] %s57_s8 }
   0xb   :  { %s45_s6 = sshll.u32 %s1223_s5, 4  ;;  %s1224_s9 = smov 64   ;;  %s46_s6 = int_to_ptr.vmem [resolvable:$true] %s45_s6 }
   0xc   :  { %s1225_s10 = smov 4   ;;  %s1226_s11 = smov [#allocation8]  }
   0xd   :  { %51 = dma.hbm_to_vmem [thread:$0]  %s44_s30, 1024, %s46_s6, [#allocation6], %s1224_s9, %s1224_s9, %s1225_s10  }
   0xe   :  { %s59_s12 = sshll.u32 %s1226_s11, 4  ;;  %s60_s12 = int_to_ptr.vmem [resolvable:$true] %s59_s12 }
   0xf   :  { %62 = dma.hbm_to_vmem [thread:$0]  %s58_s8, 48, %s60_s12, [#allocation9]  }
  0x10   :  { %1209 = dma.done.wait [#allocation3], 512  }
  0x11   :  { %1210 = vsyncadd [#allocation3], 4294966784 }
  0x12   :  { %1211 = dma.done.wait [#allocation6], 5632  }
  0x13   :  { %1212 = vsyncadd [#allocation6], 4294961664 }
  0x14   :  { %1213 = dma.done.wait [#allocation9], 48  }
  0x15   :  { %1214 = vsyncadd [#allocation9], 4294967248  ;;  %v996_v0 = vld [vmem:[#allocation5 + $0xac] sm:$0xf]  ;;  %v869_v1 = vld [vmem:[#allocation5 + $0xb4] sm:$0xf0] }
  0x16   :  { %v993_v2 = vld [vmem:[#allocation5 + $0x94] sm:$0xf]  ;;  %v872_v3 = vor.u32 %v996_v0, %v869_v1  ;;  %v857_v4 = vld [vmem:[#allocation5 + $0x9c] sm:$0xf0]  ;;  %v1008_v5 = vld [vmem:[#allocation5 + $0x10c] sm:$0xf] }
  0x17   :  { %v917_v6 = vld [vmem:[#allocation5 + $0x114] sm:$0xf0]  ;;  %v860_v7 = vor.u32 %v993_v2, %v857_v4  ;;  %v1005_v9 = vld [vmem:[#allocation5 + $0xf4] sm:$0xf]  ;;  %v905_v10 = vld [vmem:[#allocation5 + $0xfc] sm:$0xf0] }
  0x18   :  { %395 = vmatpush.bf16.msra.mxu2 %v872_v3  ;;  %v920_v8 = vor.u32 %v1008_v5, %v917_v6  ;;  %v990_v11 = vld [vmem:[#allocation5 + $0x7c] sm:$0xf]  ;;  %v845_v12 = vld [vmem:[#allocation5 + $0x84] sm:$0xf0]  ;;  %v908_v13 = vor.u32 %v1005_v9, %v905_v10  ;;  %v987_v17 = vld [vmem:[#allocation5 + $0x64] sm:$0xf] }
  0x19   :  { %v1002_v14 = vld [vmem:[#allocation5 + $0xdc] sm:$0xf]  ;;  %v893_v15 = vld [vmem:[#allocation5 + $0xe4] sm:$0xf0]  ;;  %v848_v16 = vor.u32 %v990_v11, %v845_v12  ;;  %v833_v18 = vld [vmem:[#allocation5 + $0x6c] sm:$0xf0] }
  0x1a   :  { %418 = vmatpush.bf16.msra.mxu3 %v920_v8  ;;  %v896_v19 = vor.u32 %v1002_v14, %v893_v15  ;;  %v999_v20 = vld [vmem:[#allocation5 + $0xc4] sm:$0xf]  ;;  %v881_v21 = vld [vmem:[#allocation5 + $0xcc] sm:$0xf0]  ;;  %v836_v22 = vor.u32 %v987_v17, %v833_v18  ;;  %v984_v23 = vld [vmem:[#allocation5 + $0x4c] sm:$0xf] }
  0x1b   :  { %v821_v24 = vld [vmem:[#allocation5 + $0x54] sm:$0xf0]  ;;  %v884_v25 = vor.u32 %v999_v20, %v881_v21  ;;  %v971_v26 = vld [vmem:[#allocation2 + $0x4] sm:$0xf]  ;;  %v769_v27 = vld [vmem:[#allocation2 + $0x8] sm:$0xf0] }
  0x1c   :  { %396 = vmatpush.bf16.msra.mxu2 %v860_v7  ;;  %v824_v28 = vor.u32 %v984_v23, %v821_v24  ;;  %v981_v29 = vld [vmem:[#allocation5 + $0x34] sm:$0xf]  ;;  %v809_v30 = vld [vmem:[#allocation5 + $0x3c] sm:$0xf0]  ;;  %v1268_v31 = vor.u32 %v971_v26, %v769_v27  ;;  %vm350_vm0 = vcmask 523264   ;;  %v1018_v26 = vld [vmem:[#allocation7 + $0x38] sm:$0xff] }
  0x1d   :  { %v867_v32 = vld [vmem:[#allocation5 + $0xa8] sm:$0xf]  ;;  %v997_v33 = vld [vmem:[#allocation5 + $0xb0] sm:$0xf0]  ;;  %v855_v34 = vld [vmem:[#allocation5 + $0x90] sm:$0xf]  ;;  %v812_v35 = vor.u32 %v981_v29, %v809_v30 }
  0x1e   :  { %419 = vmatpush.bf16.msra.mxu3 %v908_v13  ;;  %v868_v36 = vor.u32 %v997_v33, %v867_v32  ;;  %v994_v37 = vld [vmem:[#allocation5 + $0x98] sm:$0xf0]  ;;  %v797_v39 = vld [vmem:[#allocation5 + $0x24] sm:$0xf0]  ;;  %v1009_v42 = vld [vmem:[#allocation5 + $0x110] sm:$0xf0] }
  0x1f   :  { %v978_v38 = vld [vmem:[#allocation5 + $0x1c] sm:$0xf]  ;;  %v856_v40 = vor.u32 %v994_v37, %v855_v34  ;;  %v915_v41 = vld [vmem:[#allocation5 + $0x108] sm:$0xf]  ;;  %v843_v43 = vld [vmem:[#allocation5 + $0x78] sm:$0xf] }
  0x20   :  { %397 = vmatpush.bf16.msra.mxu2 %v848_v16  ;;  %357 = vmatpush.bf16.msra.mxu0 %v868_v36  ;;  %v991_v44 = vld [vmem:[#allocation5 + $0x80] sm:$0xf0]  ;;  %v916_v45 = vor.u32 %v1009_v42, %v915_v41  ;;  %v903_v46 = vld [vmem:[#allocation5 + $0xf0] sm:$0xf]  ;;  %v800_v47 = vor.u32 %v978_v38, %v797_v39  ;;  %v1006_v48 = vld [vmem:[#allocation5 + $0xf8] sm:$0xf0] }
  0x21   :  { %v975_v49 = vld [vmem:[#allocation5 + $0x4] sm:$0xf]  ;;  %v785_v50 = vld [vmem:[#allocation5 + $0xc] sm:$0xf0]  ;;  %v904_v51 = vor.u32 %v1006_v48, %v903_v46  ;;  %v844_v52 = vor.u32 %v991_v44, %v843_v43  ;;  %v891_v53 = vld [vmem:[#allocation5 + $0xd8] sm:$0xf] }
  0x22   :  { %420 = vmatpush.bf16.msra.mxu3 %v896_v19  ;;  %380 = vmatpush.bf16.msra.mxu1 %v916_v45  ;;  %v1003_v54 = vld [vmem:[#allocation5 + $0xe0] sm:$0xf0]  ;;  %v831_v55 = vld [vmem:[#allocation5 + $0x60] sm:$0xf]  ;;  %v988_v56 = vld [vmem:[#allocation5 + $0x68] sm:$0xf0]  ;;  %v788_v57 = vor.u32 %v975_v49, %v785_v50 }
  0x23   :  { %v767_v58 = vld [vmem:[#allocation2] sm:$0xf]  ;;  %v972_v59 = vld [vmem:[#allocation2 + $0x4] sm:$0xf0]  ;;  %v973_v60 = vld [vmem:[#allocation2 + $0x14] sm:$0xf]  ;;  %v892_v61 = vor.u32 %v1003_v54, %v891_v53  ;;  %v832_v63 = vor.u32 %v988_v56, %v831_v55 }
  0x24   :  { %398 = vmatpush.bf16.msra.mxu2 %v836_v22  ;;  %358 = vmatpush.bf16.msra.mxu0 %v856_v40  ;;  %v777_v62 = vld [vmem:[#allocation2 + $0x18] sm:$0xf0]  ;;  %v879_v0 = vld [vmem:[#allocation5 + $0xc0] sm:$0xf]  ;;  %v1000_v1 = vld [vmem:[#allocation5 + $0xc8] sm:$0xf0]  ;;  %v1272_v2 = vor.u32 %v972_v59, %v767_v58 }
  0x25   :  { %v819_v3 = vld [vmem:[#allocation5 + $0x48] sm:$0xf]  ;;  %v985_v4 = vld [vmem:[#allocation5 + $0x50] sm:$0xf0]  ;;  %v1274_v5 = vor.u32 %v973_v60, %v777_v62  ;;  %v880_v6 = vor.u32 %v1000_v1, %v879_v0  ;;  %v807_v8 = vld [vmem:[#allocation5 + $0x30] sm:$0xf] }
  0x26   :  { %421 = vmatpush.bf16.msra.mxu3 %v884_v25  ;;  %381 = vmatpush.bf16.msra.mxu1 %v904_v51  ;;  %v820_v7 = vor.u32 %v985_v4, %v819_v3  ;;  %v982_v9 = vld [vmem:[#allocation5 + $0x38] sm:$0xf0]  ;;  %v795_v11 = vld [vmem:[#allocation5 + $0x18] sm:$0xf]  ;;  %v979_v12 = vld [vmem:[#allocation5 + $0x20] sm:$0xf0] }
  0x27   :  { %v808_v10 = vor.u32 %v982_v9, %v807_v8  ;;  %v796_v13 = vor.u32 %v979_v12, %v795_v11  ;;  %v783_v14 = vld [vmem:[#allocation5] sm:$0xf]  ;;  %v976_v15 = vld [vmem:[#allocation5 + $0x8] sm:$0xf0]  ;;  %v775_v16 = vld [vmem:[#allocation2 + $0x10] sm:$0xf] }
  0x28   :  { %399 = vmatpush.bf16.msra.mxu2 %v824_v28  ;;  %359 = vmatpush.bf16.msra.mxu0 %v844_v52  ;;  %v974_v17 = vld [vmem:[#allocation2 + $0x14] sm:$0xf0]  ;;  %v784_v18 = vor.u32 %v976_v15, %v783_v14  ;;  %v875_v20 = vld [vmem:[#allocation5 + $0xb0] sm:$0xf]  ;;  %v998_v21 = vld [vmem:[#allocation5 + $0xb8] sm:$0xf0] }
  0x29   :  { %927 = vmatmul.msk.bf16.vlgmr.msra.gmra.mxu3 %vm350_vm0, %v1268_v31  ;;  %v1281_v19 = vor.u32 %v974_v17, %v775_v16  ;;  %v876_v22 = vor.u32 %v998_v21, %v875_v20  ;;  %v863_v23 = vld [vmem:[#allocation5 + $0x98] sm:$0xf]  ;;  %v995_v24 = vld [vmem:[#allocation5 + $0xa0] sm:$0xf0]  ;;  %v851_v27 = vld [vmem:[#allocation5 + $0x80] sm:$0xf] }
  0x2a   :  { %382 = vmatpush.bf16.msra.mxu1 %v892_v61  ;;  %v864_v25 = vor.u32 %v995_v24, %v863_v23  ;;  %v992_v28 = vld [vmem:[#allocation5 + $0x88] sm:$0xf0]  ;;  %v1017_v30 = vld [vmem:[#allocation7 + $0x30] sm:$0xff]  ;;  %v1010_v33 = vld [vmem:[#allocation5 + $0x118] sm:$0xf0]  ;;  %s1227_s2 = smov [#allocation10]  }
  0x2b   :  { %v852_v29 = vor.u32 %v992_v28, %v851_v27  ;;  %v923_v32 = vld [vmem:[#allocation5 + $0x110] sm:$0xf]  ;;  %v839_v34 = vld [vmem:[#allocation5 + $0x68] sm:$0xf]  ;;  %v989_v36 = vld [vmem:[#allocation5 + $0x70] sm:$0xf0] }
  0x2c   :  { %400 = vmatpush.bf16.msra.mxu2 %v812_v35  ;;  %360 = vmatpush.bf16.msra.mxu0 %v832_v63  ;;  %v924_v35 = vor.u32 %v1010_v33, %v923_v32  ;;  %v840_v37 = vor.u32 %v989_v36, %v839_v34  ;;  %v1016_v38 = vld [vmem:[#allocation7 + $0x28] sm:$0xff]  ;;  %v911_v39 = vld [vmem:[#allocation5 + $0xf8] sm:$0xf]  ;;  %v1007_v40 = vld [vmem:[#allocation5 + $0x100] sm:$0xf0]  ;;  %s748_s3 = sshll.u32 %s1227_s2, 4  ;;  %s749_s3 = int_to_ptr.vmem [resolvable:$true] %s748_s3 }
  0x2d   :  { %v827_v41 = vld [vmem:[#allocation5 + $0x50] sm:$0xf]  ;;  %v912_v42 = vor.u32 %v1007_v40, %v911_v39  ;;  %v986_v43 = vld [vmem:[#allocation5 + $0x58] sm:$0xf0]  ;;  %v1288_v45 = vld [vmem:[#allocation8] sm:$0x7] }
  0x2e   :  { %383 = vmatpush.bf16.msra.mxu1 %v880_v6  ;;  %456 = vmatpush.bf16.msrb.mxu3 %v924_v35  ;;  %v828_v44 = vor.u32 %v986_v43, %v827_v41  ;;  %v1015_v46 = vld [vmem:[#allocation7 + $0x20] sm:$0xff]  ;;  %v1004_v48 = vld [vmem:[#allocation5 + $0xe8] sm:$0xf0]  ;;  %v815_v49 = vld [vmem:[#allocation5 + $0x38] sm:$0xf]  ;;  %v135_v54 = vperm.slane %v1288_v45, 1 }
  0x2f   :  { %v983_v51 = vld [vmem:[#allocation5 + $0x40] sm:$0xf0]  ;;  %v1014_v55 = vld [vmem:[#allocation7 + $0x18] sm:$0xff]  ;;  %v803_v56 = vld [vmem:[#allocation5 + $0x20] sm:$0xf]  ;;  %s750_s15 = sshll.u32 %s1368_s4, 4  ;;  %s751_s15 = int_to_ptr.hbm [resolvable:$true] %s750_s15 }
  0x30   :  { %401 = vmatpush.bf16.msra.mxu2 %v800_v47  ;;  %361 = vmatpush.bf16.msra.mxu0 %v820_v7  ;;  %v899_v47 = vld [vmem:[#allocation5 + $0xe0] sm:$0xf]  ;;  %v816_v52 = vor.u32 %v983_v51, %v815_v49  ;;  %v887_v58 = vld [vmem:[#allocation5 + $0xc8] sm:$0xf]  ;;  %v1001_v60 = vld [vmem:[#allocation5 + $0xd0] sm:$0xf0] }
  0x31   :  { %925 = vmatmul.msk.bf16.vlgmr.msra.gmra.mxu1 %vm350_vm0, %v1268_v31  ;;  %v900_v50 = vor.u32 %v1004_v48, %v899_v47  ;;  %v888_v61 = vor.u32 %v1001_v60, %v887_v58  ;;  %v1013_v63 = vld [vmem:[#allocation7 + $0x10] sm:$0xff]  ;;  %v791_v1 = vld [vmem:[#allocation5 + $0x8] sm:$0xf]  ;;  %v1011_v11 = vld [vmem:[#allocation7] sm:$0xff] }
  0x32   :  { %433 = vmatpush.bf16.msrb.mxu1 %v876_v22  ;;  %457 = vmatpush.bf16.msrb.mxu3 %v912_v42  ;;  %v977_v3 = vld [vmem:[#allocation5 + $0x10] sm:$0xf0]  ;;  %v1012_v7 = vld [vmem:[#allocation7 + $0x8] sm:$0xff] }
  0x33   :  { %v792_v4 = vor.u32 %v977_v3, %v791_v1 }
  0x34   :  { %402 = vmatpush.bf16.msra.mxu2 %v788_v57  ;;  %362 = vmatpush.bf16.msra.mxu0 %v808_v10  ;;  %v980_v57 = vld [vmem:[#allocation5 + $0x28] sm:$0xf0] }
  0x35   :  { %v804_v59 = vor.u32 %v980_v57, %v803_v56 }
  0x36   :  { %434 = vmatpush.bf16.msrb.mxu1 %v864_v25  ;;  %458 = vmatpush.bf16.msrb.mxu3 %v900_v50 }
  0x37   :  { %403 = vmatmul.bf16.vlgmr.msra.gmra.mxu2 %v1272_v2 }
  0x38   :  { %363 = vmatpush.bf16.msra.mxu0 %v796_v13  ;;  %1030 = vmatpush.bf16.msrb.mxu2 %v1018_v26 }
  0x39   :  { %928 = vmatmul.msk.bf16.gmra.mxu3 %vm350_vm0, %v1274_v5 }
  0x3a   :  { %435 = vmatpush.bf16.msrb.mxu1 %v852_v29  ;;  %459 = vmatpush.bf16.msrb.mxu3 %v888_v61 }
  0x3c   :  { %364 = vmatpush.bf16.msra.mxu0 %v784_v18  ;;  %1031 = vmatpush.bf16.msrb.mxu2 %v1017_v30 }
  0x3e   :  { %436 = vmatpush.bf16.msrb.mxu1 %v840_v37 }
  0x3f   :  { %365 = vmatmul.bf16.vlgmr.msra.gmra.mxu0 %v1272_v2 }
  0x40   :  { %697 = vmatpush.bf16.msrb.mxu0 %v1018_v26  ;;  %1032 = vmatpush.bf16.msrb.mxu2 %v1016_v38 }
  0x41   :  { %926 = vmatmul.msk.bf16.gmra.mxu1 %vm350_vm0, %v1274_v5 }
  0x42   :  { %437 = vmatpush.bf16.msrb.mxu1 %v828_v44 }
  0x44   :  { %698 = vmatpush.bf16.msrb.mxu0 %v1017_v30  ;;  %1033 = vmatpush.bf16.msrb.mxu2 %v1015_v46 }
  0x46   :  { %438 = vmatpush.bf16.msrb.mxu1 %v816_v52 }
  0x47   :  { %408 = vmatmul.bf16.gmra.mxu2 %v1281_v19 }
  0x48   :  { %699 = vmatpush.bf16.msrb.mxu0 %v1016_v38  ;;  %1034 = vmatpush.bf16.msrb.mxu2 %v1014_v55  ;;  %v80_v38 = vld [vmem:[#allocation2] sm:$0xf] }
  0x49   :  { %929 = vmatmul.msk.bf16.vlgmr.msrb.gmra.mxu3 %vm350_vm0, %v1268_v31  ;;  %v1303_v48 = vunpack.c.l.bf16 %v80_v38 }
  0x4a   :  { %439 = vmatpush.bf16.msrb.mxu1 %v804_v59 }
  0x4c   :  { %700 = vmatpush.bf16.msrb.mxu0 %v1015_v46  ;;  %1035 = vmatpush.bf16.msrb.mxu2 %v1013_v63 }
  0x4e   :  { %440 = vmatpush.bf16.msrb.mxu1 %v792_v4 }
  0x4f   :  { %370 = vmatmul.bf16.gmra.mxu0 %v1281_v19 }
  0x50   :  { %701 = vmatpush.bf16.msrb.mxu0 %v1014_v55  ;;  %1036 = vmatpush.bf16.msrb.mxu2 %v1012_v7 }
  0x51   :  { %441 = vmatmul.bf16.vlgmr.msrb.gmra.mxu1 %v1272_v2 }
  0x54   :  { %702 = vmatpush.bf16.msrb.mxu0 %v1013_v63  ;;  %1037 = vmatpush.bf16.msrb.mxu2 %v1011_v11 }
  0x58   :  { %703 = vmatpush.bf16.msrb.mxu0 %v1012_v7 }
  0x59   :  { %930 = vmatmul.msk.bf16.gmra.mxu3 %vm350_vm0, %v1274_v5 }
  0x5c   :  { %704 = vmatpush.bf16.msrb.mxu0 %v1011_v11 }
  0x61   :  { %446 = vmatmul.bf16.gmra.mxu1 %v1281_v19  ;;  %v81_v19 = vld [vmem:[#allocation2 + $0x8] sm:$0xf] }
  0x62   :  { %v1305_v51 = vunpack.c.l.bf16 %v81_v19 }
  0xac   :  { %v423_v53 = vpop.f32.mrf.mxu3 }
  0xb4   :  { %v425_v9 = vpop.f32.mrf.mxu3 }
  0xba   :  { %v404_v62 = vpop.f32.mrf.mxu2 }
  0xbb   :  { %v405_v0 = vadd.f32 %v404_v62, %v135_v54 }
  0xbc   :  { %v428_v31 = vpop.f32.mrf.mxu3 }
  0xbd   :  { %v424_v6 = vadd.f32 %v423_v53, %v405_v0 }
  0xbf   :  { %v932_v8 = vmul.f32 -1.442695, %v424_v6  ;;  %v82_v6 = vld [vmem:[#allocation2 + $0x10] sm:$0xf] }
  0xc1   :  { %1049 = vpow2.f32 %v932_v8 }
  0xc2   :  { %v406_v10 = vpop.f32.mrf.mxu2 }
  0xc3   :  { %v407_v12 = vadd.f32 %v406_v10, %v135_v54 }
  0xc4   :  { %v430_v28 = vpop.f32.mrf.mxu3 }
  0xc5   :  { %v426_v13 = vadd.f32 %v425_v9, %v407_v12  ;;  %v83_v9 = vld [vmem:[#allocation2 + $0x18] sm:$0xf] }
  0xc7   :  { %v1050_v14 = vpop.eup %1049  ;;  %v934_v15 = vmul.f32 -1.442695, %v426_v13 }
  0xc8   :  { %v496_v16 = vadd.f32 1.0, %v1050_v14 }
  0xc9   :  { %1051 = vpow2.f32 %v934_v15  ;;  %v1309_v15 = vunpack.c.l.bf16 %v82_v6 }
  0xca   :  { %1053 = vrcp.f32 %v496_v16  ;;  %v409_v17 = vpop.f32.mrf.mxu2  ;;  %v529_v37 = vand.u32 2147483648, %v496_v16  ;;  %vm523_vm2 = vweird.f32 %v496_v16  ;;  %v527_v39 = vand.u32 2147483647, %v496_v16 }
  0xcb   :  { %v410_v18 = vadd.f32 %v409_v17, %v135_v54 }
  0xcc   :  { %v530_v47 = vor.u32 1.1754944e-38, %v529_v37  ;;  %vm528_vm5 = vcmp.eq.f32.partialorder %v527_v39, 8.507059e+37 }
  0xcd   :  { %v429_v20 = vadd.f32 %v428_v31, %v410_v18  ;;  %v1311_v31 = vunpack.c.l.bf16 %v83_v9 }
  0xcf   :  { %v1052_v21 = vpop.eup %1051  ;;  %v936_v22 = vmul.f32 -1.442695, %v429_v20 }
  0xd0   :  { %v1054_v2 = vpop.eup %1053  ;;  %v498_v23 = vadd.f32 1.0, %v1052_v21 }
  0xd1   :  { %v519_v24 = vmul.f32 %v1054_v2, %v496_v16  ;;  %1055 = vpow2.f32 %v936_v22  ;;  %vm524_vm1 = vweird.f32 %v1054_v2 }
  0xd2   :  { %1057 = vrcp.f32 %v498_v23  ;;  %v411_v25 = vpop.f32.mrf.mxu2  ;;  %vm1297_vm3 = vmor %vm523_vm2, %vm524_vm1  ;;  %v559_v42 = vand.u32 2147483648, %v498_v23  ;;  %v557_v46 = vand.u32 2147483647, %v498_v23  ;;  %vm553_vm6 = vweird.f32 %v498_v23 }
  0xd3   :  { %v412_v26 = vadd.f32 %v411_v25, %v135_v54  ;;  %v520_v27 = vsub.f32 1.0, %v519_v24  ;;  %v385_v24 = vpop.f32.mrf.mxu1  ;;  %v366_v25 = vpop.f32.mrf.mxu0 }
  0xd4   :  { %v560_v55 = vor.u32 1.1754944e-38, %v559_v42  ;;  %vm558_vm8 = vcmp.eq.f32.partialorder %v557_v46, 8.507059e+37  ;;  %v1317_v46 = vperm.slane %v1288_v45, 2 }
  0xd5   :  { %v431_v29 = vadd.f32 %v430_v28, %v412_v26  ;;  %v521_v30 = vmul.f32 %v1054_v2, %v520_v27  ;;  %v134_v26 = vperm.slane %v1288_v45, 0 }
  0xd7   :  { %v1056_v32 = vpop.eup %1055  ;;  %v938_v33 = vmul.f32 -1.442695, %v431_v29  ;;  %v522_v36 = vadd.f32 %v1054_v2, %v521_v30  ;;  %v367_v29 = vadd.f32 %v366_v25, %v134_v26 }
  0xd8   :  { %v1058_v34 = vpop.eup %1057  ;;  %v500_v35 = vadd.f32 1.0, %v1056_v32 }
  0xd9   :  { %v549_v5 = vmul.f32 %v1058_v34, %v498_v23  ;;  %1059 = vpow2.f32 %v938_v33  ;;  %v526_v43 = vsel %vm1297_vm3, %v1054_v2, %v522_v36  ;;  %vm554_vm4 = vweird.f32 %v1058_v34 }
  0xda   :  { %1061 = vrcp.f32 %v500_v35  ;;  %v531_v54 = vsel %vm528_vm5, %v530_v47, %v526_v43  ;;  %vm555_vm7 = vmor %vm553_vm6, %vm554_vm4  ;;  %v589_v4 = vand.u32 2147483648, %v500_v35  ;;  %vm583_vm10 = vweird.f32 %v500_v35 }
  0xdb   :  { %v550_v40 = vsub.f32 1.0, %v549_v5  ;;  %v627_v59 = vmul.f32 %v1303_v48, %v531_v54  ;;  %v587_v7 = vand.u32 2147483647, %v500_v35  ;;  %v387_v27 = vpop.f32.mrf.mxu1  ;;  %v368_v28 = vpop.f32.mrf.mxu0  ;;  %v386_v32 = vadd.f32 %v385_v24, %v367_v29 }
  0xdc   :  { %v590_v14 = vor.u32 1.1754944e-38, %v589_v4  ;;  %v369_v30 = vadd.f32 %v368_v28, %v134_v26 }
  0xdd   :  { %v551_v44 = vmul.f32 %v1058_v34, %v550_v40  ;;  %vm588_vm13 = vcmp.eq.f32.partialorder %v587_v7, 8.507059e+37 }
  0xde   :  { %v388_v33 = vadd.f32 %v387_v27, %v369_v30 }
  0xdf   :  { %v1060_v49 = vpop.eup %1059  ;;  %v552_v50 = vadd.f32 %v1058_v34, %v551_v44 }
  0xe0   :  { %v1062_v52 = vpop.eup %1061  ;;  %v502_v53 = vadd.f32 1.0, %v1060_v49  ;;  %v933_v5 = vmul.f32 -1.442695, %v388_v33 }
  0xe1   :  { %v579_v56 = vmul.f32 %v1062_v52, %v500_v35  ;;  %v556_v57 = vsel %vm555_vm7, %v1058_v34, %v552_v50  ;;  %vm584_vm9 = vweird.f32 %v1062_v52  ;;  %v931_v34 = vmul.f32 -1.442695, %v386_v32 }
  0xe2   :  { %1063 = vrcp.f32 %v502_v53  ;;  %v561_v58 = vsel %vm558_vm8, %v560_v55, %v556_v57  ;;  %vm585_vm11 = vmor %vm583_vm10, %vm584_vm9  ;;  %v619_v10 = vand.u32 2147483648, %v502_v53  ;;  %v617_v13 = vand.u32 2147483647, %v502_v53 }
  0xe3   :  { %v628_v60 = vmul.f32 %v1305_v51, %v561_v58  ;;  %v580_v61 = vsub.f32 1.0, %v579_v56  ;;  %vm613_vm14 = vweird.f32 %v502_v53  ;;  %v390_v35 = vpop.f32.mrf.mxu1  ;;  %v371_v36 = vpop.f32.mrf.mxu0  ;;  %1065 = vpow2.f32 %v931_v34 }
  0xe4   :  { %v620_v18 = vor.u32 1.1754944e-38, %v619_v10  ;;  %vm618_vm0 = vcmp.eq.f32.partialorder %v617_v13, 8.507059e+37  ;;  %1067 = vpow2.f32 %v933_v5  ;;  %v372_v19 = vadd.f32 %v371_v36, %v134_v26 }
  0xe5   :  { %v631_v62 = vpack.c.bf16 %v628_v60, %v627_v59  ;;  %v581_v63 = vmul.f32 %v1062_v52, %v580_v61 }
  0xe6   :  { %v391_v44 = vadd.f32 %v390_v35, %v372_v19 }
  0xe7   :  { %705 = vmatmul.bf16.vlgmr.msrb.gmra.mxu0 %v631_v62  ;;  %v582_v3 = vadd.f32 %v1062_v52, %v581_v63 }
  0xe8   :  { %v1064_v0 = vpop.eup %1063  ;;  %v935_v50 = vmul.f32 -1.442695, %v391_v44 }
  0xe9   :  { %v609_v1 = vmul.f32 %v1064_v0, %v502_v53  ;;  %v586_v11 = vsel %vm585_vm11, %v1062_v52, %v582_v3  ;;  %vm614_vm12 = vweird.f32 %v1064_v0  ;;  %v1066_v37 = vpop.eup %1065  ;;  %v461_v53 = vpop.f32.mrf.mxu3 }
  0xea   :  { %v591_v17 = vsel %vm588_vm13, %v590_v14, %v586_v11  ;;  %vm615_vm15 = vmor %vm613_vm14, %vm614_vm12  ;;  %v1068_v39 = vpop.eup %1067  ;;  %v495_v40 = vadd.f32 1.0, %v1066_v37 }
  0xeb   :  { %v610_v8 = vsub.f32 1.0, %v609_v1  ;;  %v629_v22 = vmul.f32 %v1309_v15, %v591_v17  ;;  %v392_v38 = vpop.f32.mrf.mxu1  ;;  %v373_v41 = vpop.f32.mrf.mxu0  ;;  %v497_v42 = vadd.f32 1.0, %v1068_v39 }
  0xec   :  { %v374_v43 = vadd.f32 %v373_v41, %v134_v26  ;;  %1069 = vrcp.f32 %v495_v40  ;;  %vm508_vm1 = vweird.f32 %v495_v40  ;;  %v514_v11 = vand.u32 2147483648, %v495_v40 }
  0xed   :  { %v611_v12 = vmul.f32 %v1064_v0, %v610_v8  ;;  %1071 = vrcp.f32 %v497_v42  ;;  %vm538_vm3 = vweird.f32 %v497_v42 }
  0xee   :  { %v393_v49 = vadd.f32 %v392_v38, %v374_v43  ;;  %1073 = vpow2.f32 %v935_v50 }
  0xef   :  { %v612_v16 = vadd.f32 %v1064_v0, %v611_v12 }
  0xf0   :  { %v937_v55 = vmul.f32 -1.442695, %v393_v49 }
  0xf1   :  { %v616_v20 = vsel %vm615_vm15, %v1064_v0, %v612_v16  ;;  %v463_v3 = vpop.f32.mrf.mxu3  ;;  %v512_v16 = vand.u32 2147483647, %v495_v40 }
  0xf2   :  { %v621_v21 = vsel %vm618_vm0, %v620_v18, %v616_v20  ;;  %v1070_v54 = vpop.eup %1069  ;;  %1075 = vpow2.f32 %v937_v55  ;;  %v544_v18 = vand.u32 2147483648, %v497_v42 }
  0xf3   :  { %v630_v2 = vmul.f32 %v1311_v31, %v621_v21  ;;  %v442_v47 = vpop.f32.mrf.mxu1  ;;  %v1072_v56 = vpop.eup %1071  ;;  %v504_v58 = vmul.f32 %v1070_v54, %v495_v40  ;;  %vm509_vm2 = vweird.f32 %v1070_v54  ;;  %vm513_vm7 = vcmp.eq.f32.partialorder %v512_v16, 8.507059e+37 }
  0xf4   :  { %v443_v52 = vadd.f32 %v442_v47, %v1317_v46  ;;  %v534_v59 = vmul.f32 %v1072_v56, %v497_v42  ;;  %v1074_v63 = vpop.eup %1073  ;;  %vm539_vm4 = vweird.f32 %v1072_v56  ;;  %vm1326_vm5 = vmor %vm508_vm1, %vm509_vm2  ;;  %v545_v27 = vor.u32 1.1754944e-38, %v544_v18 }
  0xf5   :  { %v632_v23 = vpack.c.bf16 %v630_v2, %v629_v22  ;;  %v505_v45 = vsub.f32 1.0, %v504_v58  ;;  %v1321_v7 = vadd.f32 1.0, %v1074_v63  ;;  %v542_v22 = vand.u32 2147483647, %v497_v42  ;;  %vm1332_vm6 = vmor %vm538_vm3, %vm539_vm4 }
  0xf6   :  { %v462_v57 = vadd.f32 %v461_v53, %v443_v52  ;;  %v535_v1 = vsub.f32 1.0, %v534_v59 }
  0xf7   :  { %710 = vmatmul.bf16.vlgmr.msrb.gmra.mxu2 %v632_v23  ;;  %v506_v6 = vmul.f32 %v1070_v54, %v505_v45  ;;  %v515_v23 = vor.u32 1.1754944e-38, %v514_v11  ;;  %vm543_vm8 = vcmp.eq.f32.partialorder %v542_v22, 8.507059e+37  ;;  %vm568_vm9 = vweird.f32 %v1321_v7 }
  0xf8   :  { %v1076_v4 = vpop.eup %1075  ;;  %v536_v9 = vmul.f32 %v1072_v56, %v535_v1 }
  0xf9   :  { %v1323_v12 = vadd.f32 1.0, %v1076_v4  ;;  %v507_v14 = vadd.f32 %v1070_v54, %v506_v6  ;;  %v466_v32 = vpop.f32.mrf.mxu3 }
  0xfa   :  { %v537_v21 = vadd.f32 %v1072_v56, %v536_v9 }
  0xfb   :  { %v444_v61 = vpop.f32.mrf.mxu1  ;;  %v511_v25 = vsel %vm1326_vm5, %v1070_v54, %v507_v14  ;;  %vm598_vm11 = vweird.f32 %v1323_v12  ;;  %v602_v45 = vand.u32 2147483647, %v1323_v12 }
  0xfc   :  { %v445_v0 = vadd.f32 %v444_v61, %v1317_v46  ;;  %v541_v30 = vsel %vm1332_vm6, %v1072_v56, %v537_v21  ;;  %v516_v34 = vsel %vm513_vm7, %v515_v23, %v511_v25  ;;  %v604_v61 = vand.u32 2147483648, %v1323_v12 }
  0xfd   :  { %v546_v37 = vsel %vm543_vm8, %v545_v27, %v541_v30  ;;  %vm603_vm0 = vcmp.eq.f32.partialorder %v602_v45, 8.507059e+37 }
  0xfe   :  { %v464_v8 = vadd.f32 %v463_v3, %v445_v0  ;;  %v605_v3 = vor.u32 1.1754944e-38, %v604_v61 }
 0x101   :  { %v468_v54 = vpop.f32.mrf.mxu3 }
 0x103   :  { %v447_v2 = vpop.f32.mrf.mxu1 }
 0x104   :  { %v448_v28 = vadd.f32 %v447_v2, %v1317_v46 }
 0x106   :  { %v467_v38 = vadd.f32 %v466_v32, %v448_v28 }
 0x10b   :  { %v449_v41 = vpop.f32.mrf.mxu1 }
 0x10c   :  { %v450_v52 = vadd.f32 %v449_v41, %v1317_v46 }
 0x10e   :  { %v469_v56 = vadd.f32 %v468_v54, %v450_v52 }
 0x164   :  { %v706_v60 = vpop.f32.mrf.mxu0 }
 0x165   :  { %v716_v62 = vadd.f32 %v706_v60, %v462_v57  ;;  %v572_v60 = vand.u32 2147483647, %v1321_v7 }
 0x167   :  { %1077 = vtanh.f32 %v716_v62  ;;  %vm573_vm15 = vcmp.eq.f32.partialorder %v572_v60, 8.507059e+37 }
 0x168   :  { %1079 = vrcp.f32 %v1321_v7 }
 0x16c   :  { %v708_v10 = vpop.f32.mrf.mxu0 }
 0x16d   :  { %v717_v13 = vadd.f32 %v708_v10, %v464_v8  ;;  %v1078_v17 = vpop.eup %1077 }
 0x16e   :  { %v724_v26 = vsub.f32 %v1078_v17, %v1303_v48  ;;  %v1080_v29 = vpop.eup %1079 }
 0x16f   :  { %1081 = vtanh.f32 %v717_v13  ;;  %v564_v39 = vmul.f32 %v1080_v29, %v1321_v7  ;;  %vm569_vm10 = vweird.f32 %v1080_v29 }
 0x170   :  { %1083 = vrcp.f32 %v1323_v12  ;;  %v728_v35 = vmul.f32 %v724_v26, %v516_v34  ;;  %vm570_vm13 = vmor %vm568_vm9, %vm569_vm10 }
 0x171   :  { %v565_v49 = vsub.f32 1.0, %v564_v39 }
 0x172   :  { %v732_v43 = vadd.f32 %v728_v35, %v1303_v48  ;;  %v574_v48 = vand.u32 2147483648, %v1321_v7 }
 0x173   :  { %v566_v55 = vmul.f32 %v1080_v29, %v565_v49 }
 0x174   :  { %v575_v63 = vor.u32 1.1754944e-38, %v574_v48 }
 0x175   :  { %v1082_v33 = vpop.eup %1081 }
 0x176   :  { %v725_v5 = vsub.f32 %v1082_v33, %v1305_v51  ;;  %v1084_v36 = vpop.eup %1083 }
 0x177   :  { %v594_v19 = vmul.f32 %v1084_v36, %v1323_v12  ;;  %vm599_vm12 = vweird.f32 %v1084_v36 }
 0x178   :  { %v729_v40 = vmul.f32 %v725_v5, %v546_v37  ;;  %vm600_vm14 = vmor %vm598_vm11, %vm599_vm12 }
 0x179   :  { %v595_v53 = vsub.f32 1.0, %v594_v19 }
 0x17a   :  { %v711_v42 = vpop.f32.mrf.mxu2  ;;  %v733_v44 = vadd.f32 %v729_v40, %v1305_v51  ;;  %v567_v51 = vadd.f32 %v1080_v29, %v566_v55 }
 0x17b   :  { %v718_v47 = vadd.f32 %v711_v42, %v467_v38  ;;  %v596_v57 = vmul.f32 %v1084_v36, %v595_v53 }
 0x17c   :  { %v1022_v50 = vpack.c.bf16 %v733_v44, %v732_v43  ;;  %v571_v0 = vsel %vm570_vm13, %v1080_v29, %v567_v51 }
 0x17d   :  { %1085 = vtanh.f32 %v718_v47  ;;  %v597_v62 = vadd.f32 %v1084_v36, %v596_v57  ;;  %v576_v7 = vsel %vm573_vm15, %v575_v63, %v571_v0 }
 0x17e   :  { %1023 = vst [vmem:[#allocation10] sm:$0xff] %v1022_v50  }
 0x17f   :  { %v601_v4 = vsel %vm600_vm14, %v1084_v36, %v597_v62 }
 0x180   :  { %v606_v10 = vsel %vm603_vm0, %v605_v3, %v601_v4 }
 0x182   :  { %v713_v58 = vpop.f32.mrf.mxu2 }
 0x183   :  { %v719_v59 = vadd.f32 %v713_v58, %v469_v56  ;;  %v1086_v46 = vpop.eup %1085 }
 0x184   :  { %v726_v1 = vsub.f32 %v1086_v46, %v1309_v15 }
 0x185   :  { %1087 = vtanh.f32 %v719_v59 }
 0x186   :  { %v730_v8 = vmul.f32 %v726_v1, %v576_v7 }
 0x188   :  { %v734_v12 = vadd.f32 %v730_v8, %v1309_v15 }
 0x18b   :  { %v1088_v6 = vpop.eup %1087 }
 0x18c   :  { %v727_v9 = vsub.f32 %v1088_v6, %v1311_v31 }
 0x18e   :  { %v731_v11 = vmul.f32 %v727_v9, %v606_v10 }
 0x190   :  { %v735_v13 = vadd.f32 %v731_v11, %v1311_v31 }
 0x192   :  { %v1027_v14 = vpack.c.bf16 %v735_v13, %v734_v12 }
 0x194   :  { %1029 = vst [vmem:[#allocation10 + $0x8] sm:$0xff] %v1027_v14  }
 0x195   :  { %756 = dma.vmem_to_hbm [thread:$0]  %s749_s3, 256, %s751_s15, [#allocation4], %s1224_s9, %s1224_s9, %s1225_s10  }
 0x196   :  { %1215 = dma.done.wait [#allocation4], 256  }
 0x197   :  { %1216 = vsyncadd [#allocation4], 4294967040 }
 0x198   :  { %761 = vsyncpa [#allocation3], 1 }
 0x199   :  { %762 = vsyncpa [#allocation6], 1 }
 0x19a   :  { %763 = vsyncpa [#allocation9], 1 }
 0x19b   :  { %764 = vsyncpa [#allocation4], 1 }

</bundles_post_ra>
